<compile_context>
chip_gen: v7x
topology: tpu7x:2x2x1
jax: 0.10.0
libtpu: 0.0.40
codegen_flags: <defaults>
</compile_context>

<pallas_src>
import functools

import jax
import jax.numpy as jnp
from jax import lax
from jax.experimental import pallas as pl
from jax.experimental.pallas import tpu as pltpu


def _round_up(v: int, m: int) -> int:
    return (v + m - 1) // m * m


# --------------------------------------------------------------------------
# Stats kernel: fold (mean, var, scale, shift) into per-feature (a, b).
#   a = scale / (sqrt(var) + eps)          (module uses sqrt(var) + eps!)
#   b = shift - mean * a
# --------------------------------------------------------------------------
def _stats_kernel(x_ref, scale_ref, shift_ref, a_ref, b_ref, *, vbs: int, eps: float):
    vb = x_ref[...].astype(jnp.float32)                  # (vbs_blk, tile_c)
    vbs_blk = vb.shape[0]
    if vbs_blk != vbs:
        # Block is rounded up to a sublane multiple (and may be ragged past
        # the array end); mask the extra rows out of the statistics.
        row_ids = lax.broadcasted_iota(jnp.int32, (vbs_blk, 1), 0)
        vb = jnp.where(row_ids < vbs, vb, 0.0)
    inv_n = jnp.float32(1.0 / vbs)
    mean = jnp.sum(vb, axis=0, keepdims=True) * inv_n          # (1, tile_c)
    mean_sq = jnp.sum(vb * vb, axis=0, keepdims=True) * inv_n  # (1, tile_c)
    # Clamp fp cancellation so sqrt never sees a tiny negative variance.
    var = jnp.maximum(mean_sq - mean * mean, 0.0)
    inv_std = 1.0 / (jnp.sqrt(var) + eps)                      # exact, tiny
    a = scale_ref[...].astype(jnp.float32) * inv_std
    a_ref[...] = a
    b_ref[...] = shift_ref[...].astype(jnp.float32) - mean * a


# --------------------------------------------------------------------------
# Apply kernel: y = x * a + b  (pure element-wise FMA; HBM-bandwidth bound).
# --------------------------------------------------------------------------
def _apply_kernel(x_ref, a_ref, b_ref, o_ref):
    x = x_ref[...].astype(jnp.float32)                   # no-op cast for f32
    o_ref[...] = (x * a_ref[...] + b_ref[...]).astype(o_ref.dtype)


def virt_batch_norm_1d(x, scalers, shifters, *, virtual_batch_size=64, eps=1e-07,
                       max_block_bytes=2 * 1024 * 1024):
    """x: (virtual_batch_size + batch_size, C); scalers/shifters: (1, C)."""
    n, c = x.shape
    assert n >= virtual_batch_size, "need at least virtual_batch_size rows"
    assert scalers.shape == (1, c) and shifters.shape == (1, c)

    # ---- feature tiling: full-width when it fits comfortably (contiguous
    #      HBM reads/writes, single stats pass); 1024-lane stripes otherwise.
    if c <= 2048:
        tile_c = c                       # block == full dim: no 128-pad needed
    else:
        tile_c = 1024                    # lane-dense multiple of 128
    num_c = pl.cdiv(c, tile_c)           # ragged last feature block is fine

    # ---- row tiling: ~max_block_bytes per x block, multiple of 8 rows.
    #      Double-buffered x + out stays well inside every chip's default
    #      scoped VMEM (v5e 16 MiB, v6e/v7x 32 MiB).
    elem = x.dtype.itemsize
    rows = max(max_block_bytes // (tile_c * elem), 8)
    rows = _round_up(rows, 8)
    if rows >= n:
        tile_n = n                       # block == full dim: allowed as-is
        num_n = 1
    else:
        tile_n = rows
        num_n = pl.cdiv(n, tile_n)       # ragged last row block: OOB writes dropped

    # ---- pass 1: tiny stats kernel over the virtual batch only ----
    vbs_blk = _round_up(virtual_batch_size, 8)           # sublane-aligned slice
    stats = functools.partial(_stats_kernel, vbs=virtual_batch_size, eps=eps)
    a, b = pl.pallas_call(
        stats,
        out_shape=(jax.ShapeDtypeStruct((1, c), jnp.float32),
                   jax.ShapeDtypeStruct((1, c), jnp.float32)),
        grid_spec=pltpu.PrefetchScalarGridSpec(
            num_scalar_prefetch=0,
            grid=(num_c,),
            in_specs=[
                pl.BlockSpec((vbs_blk, tile_c), lambda j: (0, j)),
                pl.BlockSpec((1, tile_c), lambda j: (0, j)),
                pl.BlockSpec((1, tile_c), lambda j: (0, j)),
            ],
            out_specs=[
                pl.BlockSpec((1, tile_c), lambda j: (0, j)),
                pl.BlockSpec((1, tile_c), lambda j: (0, j)),
            ],
        ),
        compiler_params=pltpu.CompilerParams(
            dimension_semantics=("parallel",),
        ),
    )(x, scalers, shifters)

    # ---- pass 2: bandwidth-bound apply, both grid axes parallel ----
    out = pl.pallas_call(
        _apply_kernel,
        out_shape=jax.ShapeDtypeStruct((n, c), x.dtype),
        grid_spec=pltpu.PrefetchScalarGridSpec(
            num_scalar_prefetch=0,
            grid=(num_n, num_c),
            in_specs=[
                pl.BlockSpec((tile_n, tile_c), lambda i, j: (i, j)),
                pl.BlockSpec((1, tile_c), lambda i, j: (0, j)),
                pl.BlockSpec((1, tile_c), lambda i, j: (0, j)),
            ],
            out_specs=pl.BlockSpec((tile_n, tile_c), lambda i, j: (i, j)),
        ),
        compiler_params=pltpu.CompilerParams(
            dimension_semantics=("parallel", "parallel"),
        ),
    )(x, a, b)
    return out


def _reference(x, scalers, shifters, virtual_batch_size, eps):
    vb = x[:virtual_batch_size]
    means = vb.mean(0)
    means_sq = (vb ** 2).mean(0)
    var = means_sq - means ** 2
    y = (x - means) / (jnp.sqrt(var) + eps)
    return y * scalers + shifters


if __name__ == "__main__":
    key = jax.random.PRNGKey(0)
    k_x, k_s, k_b = jax.random.split(key, 3)

    # Test 1: small shapes consistent with the module (virtual batch 8, C=32).
    virtual_batch_size = 8
    real_batch = 8
    C = 32
    N = virtual_batch_size + real_batch

    x = jax.random.normal(k_x, (N, C), dtype=jnp.float32)
    scalers = 1.0 + 0.1 * jax.random.normal(k_s, (1, C), dtype=jnp.float32)
    shifters = 0.1 * jax.random.normal(k_b, (1, C), dtype=jnp.float32)

    out = virt_batch_norm_1d(
        x, scalers, shifters, virtual_batch_size=virtual_batch_size, eps=1e-07
    )
    out = jax.block_until_ready(out)
    ref = _reference(x, scalers, shifters, virtual_batch_size, 1e-07)
    assert out.shape == (N, C)
    assert jnp.allclose(out, ref, atol=1e-4, rtol=1e-4)

    # Test 2: non-8-aligned virtual batch + multiple row tiles with a ragged
    # tail block (small max_block_bytes to force the multi-tile path).
    vbs2, N2, C2 = 20, 20 + 300, 200
    k2x, k2s, k2b = jax.random.split(jax.random.PRNGKey(1), 3)
    x2 = jax.random.normal(k2x, (N2, C2), dtype=jnp.float32)
    s2 = 1.0 + 0.1 * jax.random.normal(k2s, (1, C2), dtype=jnp.float32)
    h2 = 0.1 * jax.random.normal(k2b, (1, C2), dtype=jnp.float32)

    out2 = jax.block_until_ready(
        virt_batch_norm_1d(x2, s2, h2, virtual_batch_size=vbs2, eps=1e-07,
                           max_block_bytes=64 * 1024)
    )
    ref2 = _reference(x2, s2, h2, vbs2, 1e-07)
    assert out2.shape == (N2, C2)
    assert jnp.allclose(out2, ref2, atol=1e-4, rtol=1e-4)

    # Test 3: wide feature axis (> 2048) exercising the feature-tiled path
    # with a ragged last feature block.
    vbs3, N3, C3 = 64, 64 + 64, 2100
    k3x, k3s, k3b = jax.random.split(jax.random.PRNGKey(2), 3)
    x3 = jax.random.normal(k3x, (N3, C3), dtype=jnp.float32)
    s3 = 1.0 + 0.1 * jax.random.normal(k3s, (1, C3), dtype=jnp.float32)
    h3 = 0.1 * jax.random.normal(k3b, (1, C3), dtype=jnp.float32)

    out3 = jax.block_until_ready(
        virt_batch_norm_1d(x3, s3, h3, virtual_batch_size=vbs3, eps=1e-07)
    )
    ref3 = _reference(x3, s3, h3, vbs3, 1e-07)
    assert out3.shape == (N3, C3)
    assert jnp.allclose(out3, ref3, atol=1e-4, rtol=1e-4)

    print("KERNEL_OK")
</pallas_src>

<mosaic_0001>
module attributes {stable_mosaic.version = 11 : i64} {
  func.func @_stats_kernel(%arg0: i32, %arg1: memref<8x32xf32, #tpu.memory_space<vmem>>, %arg2: memref<1x32xf32, #tpu.memory_space<vmem>>, %arg3: memref<1x32xf32, #tpu.memory_space<vmem>>, %arg4: memref<1x32xf32, #tpu.memory_space<vmem>>, %arg5: memref<1x32xf32, #tpu.memory_space<vmem>>) attributes {dimension_semantics = [#tpu.dimension_semantics<parallel>], iteration_bounds = array<i64: 1>, scalar_prefetch = 0 : i64, scratch_operands = 0 : i64, tpu.core_type = #tpu.core_type<tc>, window_params = [{transform_indices = @transform_0, window_bounds = array<i64: 8, 32>}, {transform_indices = @transform_1, window_bounds = array<i64: 1, 32>}, {transform_indices = @transform_2, window_bounds = array<i64: 1, 32>}, {transform_indices = @transform_3, window_bounds = array<i64: 1, 32>}, {transform_indices = @transform_4, window_bounds = array<i64: 1, 32>}]} {
    %c0 = arith.constant 0 : index
    %c0_0 = arith.constant 0 : index
    %0 = vector.load %arg1[%c0, %c0_0] : memref<8x32xf32, #tpu.memory_space<vmem>>, vector<8x32xf32>
    %cst = arith.constant dense<0.000000e+00> : vector<32xf32>
    %1 = vector.multi_reduction <add>, %0, %cst [0] : vector<8x32xf32> to vector<32xf32>
    %2 = vector.shape_cast %1 : vector<32xf32> to vector<1x32xf32>
    %cst_1 = arith.constant 1.250000e-01 : f32
    %3 = vector.broadcast %cst_1 : f32 to vector<1x32xf32>
    %4 = arith.mulf %2, %3 : vector<1x32xf32>
    %5 = arith.mulf %0, %0 : vector<8x32xf32>
    %cst_2 = arith.constant dense<0.000000e+00> : vector<32xf32>
    %6 = vector.multi_reduction <add>, %5, %cst_2 [0] : vector<8x32xf32> to vector<32xf32>
    %7 = vector.shape_cast %6 : vector<32xf32> to vector<1x32xf32>
    %cst_3 = arith.constant 1.250000e-01 : f32
    %8 = vector.broadcast %cst_3 : f32 to vector<1x32xf32>
    %9 = arith.mulf %7, %8 : vector<1x32xf32>
    %10 = arith.mulf %4, %4 : vector<1x32xf32>
    %11 = arith.subf %9, %10 : vector<1x32xf32>
    %cst_4 = arith.constant 0.000000e+00 : f32
    %12 = vector.broadcast %cst_4 : f32 to vector<1x32xf32>
    %13 = arith.maximumf %11, %12 : vector<1x32xf32>
    %14 = math.sqrt %13 : vector<1x32xf32>
    %cst_5 = arith.constant 1.000000e-07 : f32
    %15 = vector.broadcast %cst_5 : f32 to vector<1x32xf32>
    %16 = arith.addf %14, %15 : vector<1x32xf32>
    %cst_6 = arith.constant 1.000000e+00 : f32
    %17 = vector.broadcast %cst_6 : f32 to vector<1x32xf32>
    %18 = arith.divf %17, %16 : vector<1x32xf32>
    %c0_7 = arith.constant 0 : index
    %c0_8 = arith.constant 0 : index
    %19 = vector.load %arg2[%c0_7, %c0_8] : memref<1x32xf32, #tpu.memory_space<vmem>>, vector<1x32xf32>
    %20 = arith.mulf %19, %18 : vector<1x32xf32>
    %c0_9 = arith.constant 0 : index
    %c0_10 = arith.constant 0 : index
    %21 = vector.load %arg4[%c0_9, %c0_10] : memref<1x32xf32, #tpu.memory_space<vmem>>, vector<1x32xf32>
    tpu.vector_store %arg4[%c0_9, %c0_10], %20 {strides = array<i32>} : memref<1x32xf32, #tpu.memory_space<vmem>>, vector<1x32xf32>,
    %c0_11 = arith.constant 0 : index
    %c0_12 = arith.constant 0 : index
    %22 = vector.load %arg3[%c0_11, %c0_12] : memref<1x32xf32, #tpu.memory_space<vmem>>, vector<1x32xf32>
    %23 = arith.mulf %4, %20 : vector<1x32xf32>
    %24 = arith.subf %22, %23 : vector<1x32xf32>
    %c0_13 = arith.constant 0 : index
    %c0_14 = arith.constant 0 : index
    %25 = vector.load %arg5[%c0_13, %c0_14] : memref<1x32xf32, #tpu.memory_space<vmem>>, vector<1x32xf32>
    tpu.vector_store %arg5[%c0_13, %c0_14], %24 {strides = array<i32>} : memref<1x32xf32, #tpu.memory_space<vmem>>, vector<1x32xf32>,
    return
  }
  func.func @transform_0(%arg0: i32) -> (i32, i32) {
    %c0_i32 = arith.constant 0 : i32
    %c0_i32_0 = arith.constant 0 : i32
    return %c0_i32, %arg0 : i32, i32
  }
  func.func @transform_1(%arg0: i32) -> (i32, i32) {
    %c0_i32 = arith.constant 0 : i32
    %c0_i32_0 = arith.constant 0 : i32
    return %c0_i32, %arg0 : i32, i32
  }
  func.func @transform_2(%arg0: i32) -> (i32, i32) {
    %c0_i32 = arith.constant 0 : i32
    %c0_i32_0 = arith.constant 0 : i32
    return %c0_i32, %arg0 : i32, i32
  }
  func.func @transform_3(%arg0: i32) -> (i32, i32) {
    %c0_i32 = arith.constant 0 : i32
    %c0_i32_0 = arith.constant 0 : i32
    return %c0_i32, %arg0 : i32, i32
  }
  func.func @transform_4(%arg0: i32) -> (i32, i32) {
    %c0_i32 = arith.constant 0 : i32
    %c0_i32_0 = arith.constant 0 : i32
    return %c0_i32, %arg0 : i32, i32
  }
}

</mosaic_0001>

<bundles_post_ra>
// kernel: tpu_custom_call.1
= control target key start
LH: loop header
LB: loop body
LE: loop exit
PB: predicated region body
PF: predicated region fallthrough
CT: control target
= control target key end

     0   :  { %10 = vsyncpa [#allocation3], 0  ;;  %s253_s0 = inlined_call_operand.hbm [shape: f32[16,32], index: 0, kind: input, shape index: {}]   ;;  %s254_s1 = inlined_call_operand.vmem [shape: f32[1,32], index: 1, kind: input, shape index: {}]   ;;  %s255_s2 = inlined_call_operand.vmem [shape: f32[1,32], index: 2, kind: input, shape index: {}]   ;;  %s256_s3 = inlined_call_operand.hbm [shape: f32[1,32], index: 3, kind: output, shape index: {0}]   ;;  %s257_s4 = inlined_call_operand.hbm [shape: f32[1,32], index: 4, kind: output, shape index: {1}]  }
   0x1   :  { %11 = vsyncpa [#allocation4], 0 }
   0x2   :  { %12 = vsyncpa [#allocation7], 0  ;;  %s178_s15 = smov [#allocation2]   ;;  %s106_s19 = scalar_lea.hbm %s253_s0, 128 }
   0x3   :  { %s19_s16 = sshll.u32 %s178_s15, 4  ;;  %p107_p0 = scmp.ne.s32.totalorder %s253_s0, %s106_s19  ;;  %s20_s16 = int_to_ptr.vmem [resolvable:$true] %s19_s16 }
   0x4   :  { %s108_s24 = scalar_lea.hbm %s253_s0, 256  ;;  %p110_p2 = scmp.lt.u32.totalorder %s106_s19, %s253_s0 }
   0x5   :  { %p109_p1 = scmp.lt.u32.totalorder %s108_s24, %s106_s19 }
   0x7   :  { %p111_p3 = por %p110_p2, %p109_p1 }
   0x9   :  { %p112_p4 = pnand %p111_p3, %p107_p0 }
   0xb   :  { %115 = shalt.err (!%p112_p4)
}
   0xc   :  { %s116_s27 = scalar_lea.vmem %s20_s16, 128  ;;  %p121_p6 = scmp.lt.s32.totalorder %s20_s16, %s20_s16 }
   0xd   :  { %p117_p5 = scmp.ne.s32.totalorder %s20_s16, %s116_s27  ;;  %p122_p7 = scmp.lt.s32.totalorder %s116_s27, %s116_s27 }
   0xf   :  { %p123_p8 = por %p122_p7, %p121_p6 }
  0x11   :  { %p124_p9 = pnand %p123_p8, %p117_p5 }
  0x13   :  { %127 = shalt.err (!%p124_p9)
}
  0x14   :  { %22 = dma.hbm_to_vmem [thread:$0]  %s253_s0, 128, %s20_s16, [#allocation3]  }
  0x15   :  { %172 = dma.done.wait [#allocation3], 128  }
  0x16   :  { %173 = vsyncadd [#allocation3], 4294967168  ;;  %vm31_vm0 = vcmask 261120   ;;  %v30_v0 = vld [vmem:[#allocation2] sm:$0xff]  ;;  %s179_s5 = smov [#allocation5]   ;;  %vm64_vm3 = vcmask 253952  }
  0x17   :  { %v32_v1 = vsel %vm31_vm0, %v30_v0, 0.0  ;;  %v40_v2 = vmul.f32 %v30_v0, %v30_v0  ;;  %v62_v27 = vld [vmem:[%s254_s1] sm:$0x1]  ;;  %s76_s6 = sshll.u32 %s179_s5, 4  ;;  %s180_s9 = smov [#allocation6]   ;;  %s77_s6 = int_to_ptr.vmem [resolvable:$true] %s76_s6 }
  0x18   :  { %v33_v3 = vrot.slane %v32_v1, 4  ;;  %v66_v30 = vld [vmem:[%s255_s2] sm:$0x1]  ;;  %s86_s10 = sshll.u32 %s180_s9, 4  ;;  %s128_s11 = scalar_lea.vmem %s77_s6, 16  ;;  %s87_s10 = int_to_ptr.vmem [resolvable:$true] %s86_s10 }
  0x19   :  { %v41_v4 = vsel %vm31_vm0, %v40_v2, 0.0  ;;  %p129_p10 = scmp.ne.s32.totalorder %s77_s6, %s128_s11  ;;  %s132_s12 = scalar_lea.vmem %s77_s6, 32 }
  0x1a   :  { %v34_v5 = vadd.f32 %v33_v3, %v32_v1  ;;  %v42_v6 = vrot.slane %v41_v4, 4  ;;  %p133_p11 = scmp.lt.s32.totalorder %s77_s6, %s77_s6  ;;  %p134_p12 = scmp.lt.s32.totalorder %s132_s12, %s128_s11 }
  0x1c   :  { %v35_v7 = vrot.slane %v34_v5, 2  ;;  %v43_v8 = vadd.f32 %v42_v6, %v41_v4  ;;  %p135_p13 = por %p134_p12, %p133_p11 }
  0x1e   :  { %v36_v9 = vadd.f32 %v35_v7, %v34_v5  ;;  %v44_v10 = vrot.slane %v43_v8, 2  ;;  %p136_p0 = pnand %p135_p13, %p129_p10 }
  0x20   :  { %v37_v11 = vrot.slane %v36_v9, 1  ;;  %v45_v12 = vadd.f32 %v44_v10, %v43_v8 }
  0x22   :  { %v38_v13 = vadd.f32 %v37_v11, %v36_v9  ;;  %v46_v14 = vrot.slane %v45_v12, 1 }
  0x24   :  { %v39_v15 = vmul.f32 0.125, %v38_v13  ;;  %v47_v16 = vadd.f32 %v46_v14, %v45_v12 }
  0x26   :  { %v48_v17 = vmul.f32 0.125, %v47_v16  ;;  %v49_v18 = vmul.f32 %v39_v15, %v39_v15 }
  0x28   :  { %v50_v19 = vsub.f32 %v48_v17, %v49_v18 }
  0x2a   :  { %v51_v20 = vmax.f32 %v50_v19, 0.0 }
  0x2c   :  { %102 = vrsqrt.f32 %v51_v20  ;;  %vm54_vm1 = vcmp.eq.f32.partialorder %v51_v20, inf  ;;  %v57_v22 = vand.u32 2147483648, %v51_v20  ;;  %vm56_vm2 = vcmp.eq.f32.partialorder %v51_v20, 0.0 }
  0x36   :  { %v103_v21 = vpop.eup %102 }
  0x37   :  { %v53_v23 = vmul.f32 %v103_v21, %v51_v20 }
  0x39   :  { %v55_v24 = vsel %vm54_vm1, %v51_v20, %v53_v23 }
  0x3a   :  { %v58_v25 = vsel %vm56_vm2, %v57_v22, %v55_v24 }
  0x3b   :  { %v59_v26 = vadd.f32 1e-07, %v58_v25 }
  0x3d   :  { %104 = vrcp.f32 %v59_v26 }
  0x47   :  { %v105_v28 = vpop.eup %104 }
  0x48   :  { %v63_v29 = vmul.f32 %v105_v28, %v62_v27 }
  0x4a   :  { %65 = vst.msk [vmem:[#allocation5] sm:$0x1] %vm64_vm3, %v63_v29  ;;  %v67_v31 = vmul.f32 %v63_v29, %v39_v15 }
  0x4b   :  { %139 = shalt.err (!%p136_p0)
}
  0x4c   :  { %s140_s14 = scalar_lea.hbm %s256_s3, 16 }
  0x4d   :  { %p141_p1 = scmp.ne.s32.totalorder %s256_s3, %s140_s14  ;;  %p144_p2 = scmp.lt.u32.totalorder %s140_s14, %s256_s3 }
  0x4f   :  { %p146_p3 = pnand %p144_p2, %p141_p1 }
  0x51   :  { %149 = shalt.err (!%p146_p3)
}
  0x52   :  { %79 = dma.vmem_to_hbm [thread:$0]  %s77_s6, 16, %s256_s3, [#allocation4]   ;;  %v68_v32 = vsub.f32 %v66_v30, %v67_v31 }
  0x53   :  { %s150_s20 = scalar_lea.vmem %s87_s10, 16  ;;  %s154_s21 = scalar_lea.vmem %s87_s10, 32 }
  0x54   :  { %69 = vst.msk [vmem:[#allocation6] sm:$0x1] %vm64_vm3, %v68_v32  ;;  %p151_p4 = scmp.ne.s32.totalorder %s87_s10, %s150_s20  ;;  %p155_p5 = scmp.lt.s32.totalorder %s87_s10, %s87_s10 }
  0x55   :  { %p156_p6 = scmp.lt.s32.totalorder %s154_s21, %s150_s20 }
  0x57   :  { %p157_p7 = por %p156_p6, %p155_p5 }
  0x59   :  { %p158_p8 = pnand %p157_p7, %p151_p4 }
  0x5b   :  { %161 = shalt.err (!%p158_p8)
}
  0x5c   :  { %s162_s24 = scalar_lea.hbm %s257_s4, 16 }
  0x5d   :  { %p163_p9 = scmp.ne.s32.totalorder %s257_s4, %s162_s24  ;;  %p166_p10 = scmp.lt.u32.totalorder %s162_s24, %s257_s4 }
  0x5f   :  { %p168_p11 = pnand %p166_p10, %p163_p9 }
  0x61   :  { %171 = shalt.err (!%p168_p11)
}
  0x62   :  { %89 = dma.vmem_to_hbm [thread:$0]  %s87_s10, 16, %s257_s4, [#allocation7]  }
  0x63   :  { %174 = dma.done.wait [#allocation4], 16  }
  0x64   :  { %175 = vsyncadd [#allocation4], 4294967280 }
  0x65   :  { %176 = dma.done.wait [#allocation7], 16  }
  0x66   :  { %177 = vsyncadd [#allocation7], 4294967280 }
  0x67   :  { %96 = vsyncpa [#allocation3], 1 }
  0x68   :  { %97 = vsyncpa [#allocation4], 1 }
  0x69   :  { %98 = vsyncpa [#allocation7], 1 }

</bundles_post_ra>
